<compile_context>
chip_gen: v7x
topology: tpu7x:2x2x1
jax: 0.10.0
libtpu: 0.0.40
codegen_flags: <defaults>
</compile_context>

<pallas_src>
import functools

import jax
import jax.numpy as jnp
from jax.experimental import pallas as pl
from jax.experimental.pallas import tpu as pltpu

D_IN = 320
D_OUT = 320
DEFAULT_B_TILE = 2048          # multiple of 8; ~20 MB resident at full tile
VMEM_LIMIT_BYTES = 48 * 1024 * 1024

# gamma|beta table column offsets (segments: en2 g/b, en3 g/b, de1 g/b, de2 g/b)
_GB_OFF = {"en2": 0, "en3": 128, "de1": 144, "de2": 272}   # total width 400
# packed-bias column offsets (each segment padded to a 128-lane boundary)
_B_OFF = {"en1": 0, "en2": 128, "en3": 256, "de1": 384, "de2": 512, "de3": 640}
_BIAS_WIDTH = 960


# ----------------------------------------------------------------------------
# Kernel
# ----------------------------------------------------------------------------
def _net_kernel(
    x_ref, ctx_ref,
    en1_w, en2_w, en3_w, de1_w, de2_w, de3_w,
    gb_tbl, bias_ref,
    out_ref,
):
    bt = x_ref.shape[0]
    num_embed = gb_tbl.shape[0]

    x16 = x_ref[...].astype(jnp.bfloat16)

    # In-kernel embedding "gather": one-hot select rows of the precomputed
    # (num_embed, 400) gamma|beta table with a single MXU matmul.
    ids = jax.lax.broadcasted_iota(jnp.int32, (bt, num_embed), 1)
    onehot = (ctx_ref[...] == ids).astype(jnp.bfloat16)           # (bt, num_embed)
    gb = jnp.dot(onehot, gb_tbl[...],
                 preferred_element_type=jnp.float32)              # (bt, 400)

    def bias(off, width):
        return bias_ref[:, off:off + width]                       # (1, width) f32

    def mm(h16, w_ref):
        return jnp.dot(h16, w_ref[...], preferred_element_type=jnp.float32)

    def film(h16, w_ref, b_off, g_off, out_size):
        fc = jnp.maximum(mm(h16, w_ref) + bias(b_off, out_size), 0.0)
        gammas = gb[:, g_off:g_off + out_size]
        betas = gb[:, g_off + out_size:g_off + 2 * out_size]
        return jnp.maximum(gammas * fc + betas, 0.0).astype(jnp.bfloat16)

    # encoder
    h = jnp.maximum(mm(x16, en1_w) + bias(_B_OFF["en1"], 64), 0.0)   # (bt, 64)
    h = h.astype(jnp.bfloat16)
    h = film(h, en2_w, _B_OFF["en2"], _GB_OFF["en2"], 64)            # (bt, 64)
    h = film(h, en3_w, _B_OFF["en3"], _GB_OFF["en3"], 8)             # (bt, 8)

    # decoder
    h = film(h, de1_w, _B_OFF["de1"], _GB_OFF["de1"], 64)            # (bt, 64)
    h = film(h, de2_w, _B_OFF["de2"], _GB_OFF["de2"], 64)            # (bt, 64)
    dec = mm(h, de3_w) + bias(_B_OFF["de3"], D_OUT)                  # (bt, 320)

    out_ref[...] = dec.astype(out_ref.dtype)


# ----------------------------------------------------------------------------
# Parameter init (f32, torch-like layout) + packing into kernel format
# ----------------------------------------------------------------------------
def _init_linear(key, in_size, out_size):
    """Deterministic init mimicking nn.Linear (weights stored as (in, out))."""
    k_w, k_b = jax.random.split(key)
    bound = 1.0 / jnp.sqrt(in_size)
    w = jax.random.uniform(k_w, (in_size, out_size), jnp.float32, -bound, bound)
    b = jax.random.uniform(k_b, (out_size,), jnp.float32, -bound, bound)
    return w, b


def _init_film_block(key, in_size, out_size, in_betas, in_gammas):
    k1, k2, k3 = jax.random.split(key, 3)
    fc_w, fc_b = _init_linear(k1, in_size, out_size)
    g_w, g_b = _init_linear(k2, in_gammas, out_size)
    b_w, b_b = _init_linear(k3, in_betas, out_size)
    return (fc_w, fc_b, g_w, g_b, b_w, b_b)


def init_raw_params(key, embed_size):
    keys = jax.random.split(key, 6)
    return {
        "en1": _init_linear(keys[0], 320, 64),
        "en2": _init_film_block(keys[1], 64, 64, embed_size, embed_size),
        "en3": _init_film_block(keys[2], 64, 8, embed_size, embed_size),
        "de1": _init_film_block(keys[3], 8, 64, embed_size, embed_size),
        "de2": _init_film_block(keys[4], 64, 64, embed_size, embed_size),
        "de3": _init_linear(keys[5], 64, 320),
    }


def pack_kernel_params(raw, embeddings):
    """bf16 fc weights, packed lane-aligned biases, and the gamma|beta table
    pre-folded through the (fixed, pretrained) embedding table."""
    def w16(w):
        return w.astype(jnp.bfloat16)

    en1_w, en1_b = raw["en1"]
    de3_w, de3_b = raw["de3"]

    fc_ws, fc_bs, gb_segs = [], [], []
    for name in ("en2", "en3", "de1", "de2"):
        fc_w, fc_b, g_w, g_b, b_w, b_b = raw[name]
        fc_ws.append(w16(fc_w))
        fc_bs.append(fc_b)
        gb_segs.append(embeddings @ g_w + g_b)     # (num_embed, out) gammas
        gb_segs.append(embeddings @ b_w + b_b)     # (num_embed, out) betas
    gb_table = jnp.concatenate(gb_segs, axis=1).astype(jnp.bfloat16)   # (num_embed, 400)

    def seg(b, width):
        return jnp.pad(b, (0, width - b.shape[0]))

    bias = jnp.concatenate([
        seg(en1_b, 128),
        seg(fc_bs[0], 128),     # en2 fc
        seg(fc_bs[1], 128),     # en3 fc
        seg(fc_bs[2], 128),     # de1 fc
        seg(fc_bs[3], 128),     # de2 fc
        de3_b,                  # 320
    ]).reshape(1, _BIAS_WIDTH).astype(jnp.float32)

    return [w16(en1_w), fc_ws[0], fc_ws[1], fc_ws[2], fc_ws[3], w16(de3_w),
            gb_table, bias]


# ----------------------------------------------------------------------------
# Wrapper
# ----------------------------------------------------------------------------
def _round_up(v, m):
    return ((v + m - 1) // m) * m


@functools.partial(jax.jit, static_argnames=("b_tile",))
def net_forward(x, context, kparams, *, b_tile=DEFAULT_B_TILE):
    """x: (B, 320) f32, context: (B,) int, kparams: output of pack_kernel_params."""
    B = x.shape[0]
    ctx = context.reshape(B, 1).astype(jnp.int32)

    # Tile: <= b_tile, multiple of 8, and <= ceil(B/2) rounded up so the grid
    # has >= 2 steps whenever possible (both v7x TensorCores get work).
    bt = min(b_tile, _round_up(max(B // 2 + (B % 2), 1), 8), _round_up(B, 8))
    if B < 8:
        bt = B
    nb = pl.cdiv(B, bt)

    row_map = lambda i: (i, 0)
    const_map = lambda i: (0, 0)     # block index never changes -> DMA'd once

    in_specs = (
        [pl.BlockSpec((bt, D_IN), row_map),
         pl.BlockSpec((bt, 1), row_map)]
        + [pl.BlockSpec(p.shape, const_map) for p in kparams]
    )
    out_specs = pl.BlockSpec((bt, D_OUT), row_map)

    num_embed = kparams[6].shape[0]
    flops = 2 * B * (
        320 * 64                  # en_1
        + num_embed * 400         # one-hot gamma/beta select
        + 64 * 64 + 64 * 8        # en_2 / en_3 fc
        + 8 * 64 + 64 * 64        # de_1 / de_2 fc
        + 64 * D_OUT              # de_3
    )
    param_bytes = sum(int(p.size) * p.dtype.itemsize for p in kparams)
    bytes_accessed = B * (D_IN * 4 + 4) + B * D_OUT * 4 + param_bytes
    cost = pl.CostEstimate(flops=flops, transcendentals=0,
                           bytes_accessed=bytes_accessed)

    out = pl.pallas_call(
        _net_kernel,
        out_shape=jax.ShapeDtypeStruct((B, D_OUT), jnp.float32),
        grid=(nb,),
        in_specs=in_specs,
        out_specs=out_specs,
        compiler_params=pltpu.CompilerParams(
            dimension_semantics=("parallel",),
            vmem_limit_bytes=VMEM_LIMIT_BYTES),
        cost_estimate=cost,
    )(x, ctx, *kparams)

    return out


# ----------------------------------------------------------------------------
# Pure-JAX f32 reference (module semantics) for the self-test
# ----------------------------------------------------------------------------
def _reference_forward(x, context, embeddings, raw):
    gammas = embeddings[context]
    betas = embeddings[context]

    def lin(v, w, b):
        return v @ w + b

    def film(v, gs, bs, fc_w, fc_b, g_w, g_b, b_w, b_b):
        fc = jax.nn.relu(lin(v, fc_w, fc_b))
        return jax.nn.relu(lin(gs, g_w, g_b) * fc + lin(bs, b_w, b_b))

    enc = jax.nn.relu(lin(x, *raw["en1"]))
    enc = film(enc, gammas, betas, *raw["en2"])
    enc = film(enc, gammas, betas, *raw["en3"])
    dec = film(enc, gammas, betas, *raw["de1"])
    dec = film(dec, gammas, betas, *raw["de2"])
    dec = lin(dec, *raw["de3"])
    return dec


if __name__ == "__main__":
    key = jax.random.PRNGKey(0)
    k_emb, k_x, k_ctx, k_param = jax.random.split(key, 4)

    num_embed, embed_size = 10, 32
    batch = 8

    embeddings = jax.random.normal(k_emb, (num_embed, embed_size), jnp.float32)
    x = jax.random.normal(k_x, (batch, 320), jnp.float32)
    context = jax.random.randint(k_ctx, (batch,), 0, num_embed, jnp.int32)

    raw_params = init_raw_params(k_param, embed_size)
    kparams = pack_kernel_params(raw_params, embeddings)

    out = net_forward(x, context, kparams)
    out = jax.block_until_ready(out)

    ref = _reference_forward(x, context, embeddings, raw_params)
    assert out.shape == (batch, 320)
    # bf16 matmul operands / bf16 gamma-beta table -> compare against the f32
    # reference with a bf16-aware tolerance (relative L2 error).
    rel_err = jnp.linalg.norm(out - ref) / (jnp.linalg.norm(ref) + 1e-12)
    assert rel_err < 3e-2, f"mismatch vs reference (rel_err={rel_err})"

    print("KERNEL_OK")
</pallas_src>

<mosaic_0001>
module attributes {stable_mosaic.version = 11 : i64} {
  func.func @_net_kernel(%arg0: i32, %arg1: memref<8x320xf32, #tpu.memory_space<vmem>>, %arg2: memref<8x1xi32, #tpu.memory_space<vmem>>, %arg3: memref<320x64xbf16, #tpu.memory_space<vmem>>, %arg4: memref<64x64xbf16, #tpu.memory_space<vmem>>, %arg5: memref<64x8xbf16, #tpu.memory_space<vmem>>, %arg6: memref<8x64xbf16, #tpu.memory_space<vmem>>, %arg7: memref<64x64xbf16, #tpu.memory_space<vmem>>, %arg8: memref<64x320xbf16, #tpu.memory_space<vmem>>, %arg9: memref<10x400xbf16, #tpu.memory_space<vmem>>, %arg10: memref<1x960xf32, #tpu.memory_space<vmem>>, %arg11: memref<8x320xf32, #tpu.memory_space<vmem>>) attributes {dimension_semantics = [#tpu.dimension_semantics<parallel>], iteration_bounds = array<i64: 1>, scalar_prefetch = 0 : i64, scratch_operands = 0 : i64, tpu.core_type = #tpu.core_type<tc>, window_params = [{transform_indices = @transform_0, window_bounds = array<i64: 8, 320>}, {transform_indices = @transform_1, window_bounds = array<i64: 8, 1>}, {pipeline_mode = #tpu.pipeline_mode<synchronous>, transform_indices = @transform_2, window_bounds = array<i64: 320, 64>}, {pipeline_mode = #tpu.pipeline_mode<synchronous>, transform_indices = @transform_3, window_bounds = array<i64: 64, 64>}, {pipeline_mode = #tpu.pipeline_mode<synchronous>, transform_indices = @transform_4, window_bounds = array<i64: 64, 8>}, {pipeline_mode = #tpu.pipeline_mode<synchronous>, transform_indices = @transform_5, window_bounds = array<i64: 8, 64>}, {pipeline_mode = #tpu.pipeline_mode<synchronous>, transform_indices = @transform_6, window_bounds = array<i64: 64, 64>}, {pipeline_mode = #tpu.pipeline_mode<synchronous>, transform_indices = @transform_7, window_bounds = array<i64: 64, 320>}, {pipeline_mode = #tpu.pipeline_mode<synchronous>, transform_indices = @transform_8, window_bounds = array<i64: 10, 400>}, {pipeline_mode = #tpu.pipeline_mode<synchronous>, transform_indices = @transform_9, window_bounds = array<i64: 1, 960>}, {transform_indices = @transform_10, window_bounds = array<i64: 8, 320>}]} {
    %c0 = arith.constant 0 : index
    %c0_0 = arith.constant 0 : index
    %0 = vector.load %arg1[%c0, %c0_0] : memref<8x320xf32, #tpu.memory_space<vmem>>, vector<8x320xf32>
    %1 = arith.truncf %0 : vector<8x320xf32> to vector<8x320xbf16>
    %2 = tpu.iota {dimensions = array<i32: 1>} : vector<8x10xi32>
    %c0_1 = arith.constant 0 : index
    %c0_2 = arith.constant 0 : index
    %3 = vector.load %arg2[%c0_1, %c0_2] : memref<8x1xi32, #tpu.memory_space<vmem>>, vector<8x1xi32>
    %4 = vector.broadcast %3 : vector<8x1xi32> to vector<8x10xi32>
    %5 = arith.cmpi eq, %4, %2 : vector<8x10xi32>
    %6 = arith.extui %5 : vector<8x10xi1> to vector<8x10xi32>
    %7 = arith.sitofp %6 : vector<8x10xi32> to vector<8x10xf32>
    %8 = arith.truncf %7 : vector<8x10xf32> to vector<8x10xbf16>
    %c0_3 = arith.constant 0 : index
    %c0_4 = arith.constant 0 : index
    %9 = vector.load %arg9[%c0_3, %c0_4] : memref<10x400xbf16, #tpu.memory_space<vmem>>, vector<10x400xbf16>
    %cst = arith.constant dense<0.000000e+00> : vector<8x400xf32>
    %10 = tpu.matmul %8, %9, %cst {dimension_numbers = #tpu.dot_dimension_numbers<[1], [0], [0], [1], [0, 0, 1, 1], [], []>} : vector<8x10xbf16>, vector<10x400xbf16>, vector<8x400xf32> -> vector<8x400xf32>
    %c0_5 = arith.constant 0 : index
    %c0_6 = arith.constant 0 : index
    %11 = vector.load %arg3[%c0_5, %c0_6] : memref<320x64xbf16, #tpu.memory_space<vmem>>, vector<320x64xbf16>
    %cst_7 = arith.constant dense<0.000000e+00> : vector<8x64xf32>
    %12 = tpu.matmul %1, %11, %cst_7 {dimension_numbers = #tpu.dot_dimension_numbers<[1], [0], [0], [1], [0, 0, 1, 1], [], []>} : vector<8x320xbf16>, vector<320x64xbf16>, vector<8x64xf32> -> vector<8x64xf32>
    %c0_8 = arith.constant 0 : index
    %c0_9 = arith.constant 0 : index
    %13 = vector.load %arg10[%c0_8, %c0_9] : memref<1x960xf32, #tpu.memory_space<vmem>>, vector<1x64xf32>
    %14 = vector.broadcast %13 : vector<1x64xf32> to vector<8x64xf32>
    %15 = arith.addf %12, %14 : vector<8x64xf32>
    %cst_10 = arith.constant 0.000000e+00 : f32
    %16 = vector.broadcast %cst_10 : f32 to vector<8x64xf32>
    %17 = arith.maximumf %15, %16 : vector<8x64xf32>
    %18 = arith.truncf %17 : vector<8x64xf32> to vector<8x64xbf16>
    %c0_11 = arith.constant 0 : index
    %c0_12 = arith.constant 0 : index
    %19 = vector.load %arg4[%c0_11, %c0_12] : memref<64x64xbf16, #tpu.memory_space<vmem>>, vector<64x64xbf16>
    %cst_13 = arith.constant dense<0.000000e+00> : vector<8x64xf32>
    %20 = tpu.matmul %18, %19, %cst_13 {dimension_numbers = #tpu.dot_dimension_numbers<[1], [0], [0], [1], [0, 0, 1, 1], [], []>} : vector<8x64xbf16>, vector<64x64xbf16>, vector<8x64xf32> -> vector<8x64xf32>
    %c0_14 = arith.constant 0 : index
    %c128 = arith.constant 128 : index
    %21 = vector.load %arg10[%c0_14, %c128] : memref<1x960xf32, #tpu.memory_space<vmem>>, vector<1x64xf32>
    %22 = vector.broadcast %21 : vector<1x64xf32> to vector<8x64xf32>
    %23 = arith.addf %20, %22 : vector<8x64xf32>
    %cst_15 = arith.constant 0.000000e+00 : f32
    %24 = vector.broadcast %cst_15 : f32 to vector<8x64xf32>
    %25 = arith.maximumf %23, %24 : vector<8x64xf32>
    %26 = vector.extract_strided_slice %10 {offsets = [0, 0], sizes = [8, 64], strides = [1, 1]} : vector<8x400xf32> to vector<8x64xf32>
    %27 = vector.extract_strided_slice %10 {offsets = [0, 64], sizes = [8, 64], strides = [1, 1]} : vector<8x400xf32> to vector<8x64xf32>
    %28 = arith.mulf %26, %25 : vector<8x64xf32>
    %29 = arith.addf %28, %27 : vector<8x64xf32>
    %cst_16 = arith.constant 0.000000e+00 : f32
    %30 = vector.broadcast %cst_16 : f32 to vector<8x64xf32>
    %31 = arith.maximumf %29, %30 : vector<8x64xf32>
    %32 = arith.truncf %31 : vector<8x64xf32> to vector<8x64xbf16>
    %c0_17 = arith.constant 0 : index
    %c0_18 = arith.constant 0 : index
    %33 = vector.load %arg5[%c0_17, %c0_18] : memref<64x8xbf16, #tpu.memory_space<vmem>>, vector<64x8xbf16>
    %cst_19 = arith.constant dense<0.000000e+00> : vector<8x8xf32>
    %34 = tpu.matmul %32, %33, %cst_19 {dimension_numbers = #tpu.dot_dimension_numbers<[1], [0], [0], [1], [0, 0, 1, 1], [], []>} : vector<8x64xbf16>, vector<64x8xbf16>, vector<8x8xf32> -> vector<8x8xf32>
    %c0_20 = arith.constant 0 : index
    %c256 = arith.constant 256 : index
    %35 = vector.load %arg10[%c0_20, %c256] : memref<1x960xf32, #tpu.memory_space<vmem>>, vector<1x8xf32>
    %36 = vector.broadcast %35 : vector<1x8xf32> to vector<8x8xf32>
    %37 = arith.addf %34, %36 : vector<8x8xf32>
    %cst_21 = arith.constant 0.000000e+00 : f32
    %38 = vector.broadcast %cst_21 : f32 to vector<8x8xf32>
    %39 = arith.maximumf %37, %38 : vector<8x8xf32>
    %40 = vector.extract_strided_slice %10 {offsets = [0, 128], sizes = [8, 8], strides = [1, 1]} : vector<8x400xf32> to vector<8x8xf32>
    %41 = vector.extract_strided_slice %10 {offsets = [0, 136], sizes = [8, 8], strides = [1, 1]} : vector<8x400xf32> to vector<8x8xf32>
    %42 = arith.mulf %40, %39 : vector<8x8xf32>
    %43 = arith.addf %42, %41 : vector<8x8xf32>
    %cst_22 = arith.constant 0.000000e+00 : f32
    %44 = vector.broadcast %cst_22 : f32 to vector<8x8xf32>
    %45 = arith.maximumf %43, %44 : vector<8x8xf32>
    %46 = arith.truncf %45 : vector<8x8xf32> to vector<8x8xbf16>
    %c0_23 = arith.constant 0 : index
    %c0_24 = arith.constant 0 : index
    %47 = vector.load %arg6[%c0_23, %c0_24] : memref<8x64xbf16, #tpu.memory_space<vmem>>, vector<8x64xbf16>
    %cst_25 = arith.constant dense<0.000000e+00> : vector<8x64xf32>
    %48 = tpu.matmul %46, %47, %cst_25 {dimension_numbers = #tpu.dot_dimension_numbers<[1], [0], [0], [1], [0, 0, 1, 1], [], []>} : vector<8x8xbf16>, vector<8x64xbf16>, vector<8x64xf32> -> vector<8x64xf32>
    %c0_26 = arith.constant 0 : index
    %c384 = arith.constant 384 : index
    %49 = vector.load %arg10[%c0_26, %c384] : memref<1x960xf32, #tpu.memory_space<vmem>>, vector<1x64xf32>
    %50 = vector.broadcast %49 : vector<1x64xf32> to vector<8x64xf32>
    %51 = arith.addf %48, %50 : vector<8x64xf32>
    %cst_27 = arith.constant 0.000000e+00 : f32
    %52 = vector.broadcast %cst_27 : f32 to vector<8x64xf32>
    %53 = arith.maximumf %51, %52 : vector<8x64xf32>
    %54 = vector.extract_strided_slice %10 {offsets = [0, 144], sizes = [8, 64], strides = [1, 1]} : vector<8x400xf32> to vector<8x64xf32>
    %55 = vector.extract_strided_slice %10 {offsets = [0, 208], sizes = [8, 64], strides = [1, 1]} : vector<8x400xf32> to vector<8x64xf32>
    %56 = arith.mulf %54, %53 : vector<8x64xf32>
    %57 = arith.addf %56, %55 : vector<8x64xf32>
    %cst_28 = arith.constant 0.000000e+00 : f32
    %58 = vector.broadcast %cst_28 : f32 to vector<8x64xf32>
    %59 = arith.maximumf %57, %58 : vector<8x64xf32>
    %60 = arith.truncf %59 : vector<8x64xf32> to vector<8x64xbf16>
    %c0_29 = arith.constant 0 : index
    %c0_30 = arith.constant 0 : index
    %61 = vector.load %arg7[%c0_29, %c0_30] : memref<64x64xbf16, #tpu.memory_space<vmem>>, vector<64x64xbf16>
    %cst_31 = arith.constant dense<0.000000e+00> : vector<8x64xf32>
    %62 = tpu.matmul %60, %61, %cst_31 {dimension_numbers = #tpu.dot_dimension_numbers<[1], [0], [0], [1], [0, 0, 1, 1], [], []>} : vector<8x64xbf16>, vector<64x64xbf16>, vector<8x64xf32> -> vector<8x64xf32>
    %c0_32 = arith.constant 0 : index
    %c512 = arith.constant 512 : index
    %63 = vector.load %arg10[%c0_32, %c512] : memref<1x960xf32, #tpu.memory_space<vmem>>, vector<1x64xf32>
    %64 = vector.broadcast %63 : vector<1x64xf32> to vector<8x64xf32>
    %65 = arith.addf %62, %64 : vector<8x64xf32>
    %cst_33 = arith.constant 0.000000e+00 : f32
    %66 = vector.broadcast %cst_33 : f32 to vector<8x64xf32>
    %67 = arith.maximumf %65, %66 : vector<8x64xf32>
    %68 = vector.extract_strided_slice %10 {offsets = [0, 272], sizes = [8, 64], strides = [1, 1]} : vector<8x400xf32> to vector<8x64xf32>
    %69 = vector.extract_strided_slice %10 {offsets = [0, 336], sizes = [8, 64], strides = [1, 1]} : vector<8x400xf32> to vector<8x64xf32>
    %70 = arith.mulf %68, %67 : vector<8x64xf32>
    %71 = arith.addf %70, %69 : vector<8x64xf32>
    %cst_34 = arith.constant 0.000000e+00 : f32
    %72 = vector.broadcast %cst_34 : f32 to vector<8x64xf32>
    %73 = arith.maximumf %71, %72 : vector<8x64xf32>
    %74 = arith.truncf %73 : vector<8x64xf32> to vector<8x64xbf16>
    %c0_35 = arith.constant 0 : index
    %c0_36 = arith.constant 0 : index
    %75 = vector.load %arg8[%c0_35, %c0_36] : memref<64x320xbf16, #tpu.memory_space<vmem>>, vector<64x320xbf16>
    %cst_37 = arith.constant dense<0.000000e+00> : vector<8x320xf32>
    %76 = tpu.matmul %74, %75, %cst_37 {dimension_numbers = #tpu.dot_dimension_numbers<[1], [0], [0], [1], [0, 0, 1, 1], [], []>} : vector<8x64xbf16>, vector<64x320xbf16>, vector<8x320xf32> -> vector<8x320xf32>
    %c0_38 = arith.constant 0 : index
    %c640 = arith.constant 640 : index
    %77 = vector.load %arg10[%c0_38, %c640] : memref<1x960xf32, #tpu.memory_space<vmem>>, vector<1x320xf32>
    %78 = vector.broadcast %77 : vector<1x320xf32> to vector<8x320xf32>
    %79 = arith.addf %76, %78 : vector<8x320xf32>
    %c0_39 = arith.constant 0 : index
    %c0_40 = arith.constant 0 : index
    %80 = vector.load %arg11[%c0_39, %c0_40] : memref<8x320xf32, #tpu.memory_space<vmem>>, vector<8x320xf32>
    tpu.vector_store %arg11[%c0_39, %c0_40], %79 {strides = array<i32>} : memref<8x320xf32, #tpu.memory_space<vmem>>, vector<8x320xf32>,
    return
  }
  func.func @transform_0(%arg0: i32) -> (i32, i32) {
    %c0_i32 = arith.constant 0 : i32
    %c0_i32_0 = arith.constant 0 : i32
    return %arg0, %c0_i32 : i32, i32
  }
  func.func @transform_1(%arg0: i32) -> (i32, i32) {
    %c0_i32 = arith.constant 0 : i32
    %c0_i32_0 = arith.constant 0 : i32
    return %arg0, %c0_i32 : i32, i32
  }
  func.func @transform_2(%arg0: i32) -> (i32, i32) {
    %c0_i32 = arith.constant 0 : i32
    %c0_i32_0 = arith.constant 0 : i32
    %c0_i32_1 = arith.constant 0 : i32
    return %c0_i32, %c0_i32_0 : i32, i32
  }
  func.func @transform_3(%arg0: i32) -> (i32, i32) {
    %c0_i32 = arith.constant 0 : i32
    %c0_i32_0 = arith.constant 0 : i32
    %c0_i32_1 = arith.constant 0 : i32
    return %c0_i32, %c0_i32_0 : i32, i32
  }
  func.func @transform_4(%arg0: i32) -> (i32, i32) {
    %c0_i32 = arith.constant 0 : i32
    %c0_i32_0 = arith.constant 0 : i32
    %c0_i32_1 = arith.constant 0 : i32
    return %c0_i32, %c0_i32_0 : i32, i32
  }
  func.func @transform_5(%arg0: i32) -> (i32, i32) {
    %c0_i32 = arith.constant 0 : i32
    %c0_i32_0 = arith.constant 0 : i32
    %c0_i32_1 = arith.constant 0 : i32
    return %c0_i32, %c0_i32_0 : i32, i32
  }
  func.func @transform_6(%arg0: i32) -> (i32, i32) {
    %c0_i32 = arith.constant 0 : i32
    %c0_i32_0 = arith.constant 0 : i32
    %c0_i32_1 = arith.constant 0 : i32
    return %c0_i32, %c0_i32_0 : i32, i32
  }
  func.func @transform_7(%arg0: i32) -> (i32, i32) {
    %c0_i32 = arith.constant 0 : i32
    %c0_i32_0 = arith.constant 0 : i32
    %c0_i32_1 = arith.constant 0 : i32
    return %c0_i32, %c0_i32_0 : i32, i32
  }
  func.func @transform_8(%arg0: i32) -> (i32, i32) {
    %c0_i32 = arith.constant 0 : i32
    %c0_i32_0 = arith.constant 0 : i32
    %c0_i32_1 = arith.constant 0 : i32
    return %c0_i32, %c0_i32_0 : i32, i32
  }
  func.func @transform_9(%arg0: i32) -> (i32, i32) {
    %c0_i32 = arith.constant 0 : i32
    %c0_i32_0 = arith.constant 0 : i32
    %c0_i32_1 = arith.constant 0 : i32
    return %c0_i32, %c0_i32_0 : i32, i32
  }
  func.func @transform_10(%arg0: i32) -> (i32, i32) {
    %c0_i32 = arith.constant 0 : i32
    %c0_i32_0 = arith.constant 0 : i32
    return %arg0, %c0_i32 : i32, i32
  }
}

</mosaic_0001>

<bundles_post_ra>
// kernel: net_forward.1
= control target key start
LH: loop header
LB: loop body
LE: loop exit
PB: predicated region body
PF: predicated region fallthrough
CT: control target
= control target key end

     0   :  { %vm77_vm0 = vcmask 1044480   ;;  %v1246_v1 = vmov 0   ;;  %v1247_v9 = vmov 0.0   ;;  %s1568_s0 = inlined_call_operand.vmem [shape: f32[8,320], index: 0, kind: input, shape index: {}]   ;;  %s1569_s1 = inlined_call_operand.vmem [shape: s32[8,1], index: 1, kind: input, shape index: {}]   ;;  %s1570_s2 = inlined_call_operand.vmem [shape: bf16[320,64], index: 2, kind: input, shape index: {}]   ;;  %s1571_s3 = inlined_call_operand.vmem [shape: bf16[64,64], index: 3, kind: input, shape index: {}]   ;;  %s1572_s4 = inlined_call_operand.vmem [shape: bf16[64,8], index: 4, kind: input, shape index: {}]   ;;  %s1573_s5 = inlined_call_operand.vmem [shape: bf16[8,64], index: 5, kind: input, shape index: {}]   ;;  %s1574_s6 = inlined_call_operand.vmem [shape: bf16[64,64], index: 6, kind: input, shape index: {}]   ;;  %s1575_s7 = inlined_call_operand.vmem [shape: bf16[64,320], index: 7, kind: input, shape index: {}]   ;;  %s1576_s8 = inlined_call_operand.vmem [shape: bf16[10,400], index: 8, kind: input, shape index: {}]   ;;  %s1577_s9 = inlined_call_operand.vmem [shape: f32[1,960], index: 9, kind: input, shape index: {}]   ;;  %s1578_s10 = inlined_call_operand.hbm [shape: f32[8,320], index: 10, kind: output, shape index: {}]  }
   0x1   :  { %v45_v0 = vld [vmem:[%s1569_s1] sm:$0xff]  ;;  %1167 = vset.pattern.permute.xlu0 %v1246_v1  ;;  %122 = vmatprep.mubr.bf16.mxu0 %v1246_v1  ;;  %v1171_v4 = vld [vmem:[%s1576_s8 + $0xc] ss:$16 sps:$4 sm:$0x1f]  }
   0x2   :  { %v1168_v2 = vld [vmem:[%s1576_s8 + $0x4] ss:$16 sps:$4 sm:$0x1f]   ;;  %47 = vperm.xlu0 %1167, %v45_v0   ;;  %v1170_v3 = vld [vmem:[%s1576_s8] ss:$16 sps:$4 sm:$0x1f]   ;;  %163 = vmatprep.mubr.bf16.mxu1 %v1246_v1 }
   0x3   :  { %984 = vmatprep.subr.msk.bf16.mxu0 %vm77_vm0, %v1168_v2  ;;  %v1173_v5 = vld [vmem:[%s1576_s8 + $0x8] ss:$16 sps:$4 sm:$0x1f]   ;;  %v79_v6 = vsel %vm77_vm0, %v1170_v3, 0  ;;  %986 = vmatprep.subr.msk.bf16.mxu1 %vm77_vm0, %v1171_v4  ;;  %v1174_v8 = vld [vmem:[%s1570_s2 + $0x40] sm:$0xff]  }
   0x4   :  { %91 = vmatpush1.bf16.msra.mxu0 %v79_v6  ;;  %v85_v7 = vsel %vm77_vm0, %v1173_v5, 0 }
   0x5   :  { %132 = vmatpush1.bf16.msra.mxu1 %v85_v7  ;;  %1044 = vmatprep.subr.bf16.mxu0 %v1174_v8 }
   0x6   :  { %1093 = vmatprep.subr.bf16.mxu1 %v1247_v9 }
   0x7   :  { %15 = vsyncpa [#allocation3], 0  ;;  %v43_v10 = vlaneseq  ;;  %v38_v13 = vld [vmem:[%s1568_s0 + $0x8] sm:$0xff]  ;;  %vm73_vm2 = vcmask 80896   ;;  %v1175_v15 = vld [vmem:[%s1570_s2] sm:$0xff]   ;;  %vm1248_vm3 = vmmov 0  }
   0x8   :  { %v1184_v16 = vld [vmem:[%s1570_s2 + $0x80] sm:$0xff]   ;;  %v1176_v18 = vld [vmem:[%s1570_s2 + $0x48] sm:$0xff]   ;;  %v41_v19 = vpack.c.bf16 %v38_v13, %v38_v13  ;;  %v1178_v22 = vld [vmem:[%s1570_s2 + $0x50] sm:$0xff]   ;;  %vm339_vm4 = vcmask 523264   ;;  %s1249_s11 = smov 64   ;;  %vm619_vm5 = vcmask 1043456  }
   0x9   :  { %v44_v11 = vand.u32 127, %v43_v10  ;;  %v1177_v20 = vld [vmem:[%s1570_s2 + $0x8] sm:$0xff]   ;;  %v1179_v23 = vld [vmem:[%s1570_s2 + $0x10] sm:$0xff]   ;;  %v1180_v25 = vld [vmem:[%s1570_s2 + $0x58] sm:$0xff]   ;;  %vm615_vm6 = vcmask 64512   ;;  %s1251_s24 = smov 16  }
   0xa   :  { %v1187_v21 = vld [vmem:[%s1570_s2 + $0x88] sm:$0xff]   ;;  %v1190_v24 = vld [vmem:[%s1570_s2 + $0x90] sm:$0xff]   ;;  %v1181_v26 = vld [vmem:[%s1570_s2 + $0x18] sm:$0xff]  }
   0xb   :  { %v1193_v27 = vld [vmem:[%s1570_s2 + $0x98] sm:$0xff]   ;;  %v39_v28 = vld [vmem:[%s1568_s0 + $0x10] sm:$0xff]  ;;  %v1182_v29 = vld [vmem:[%s1570_s2 + $0x60] sm:$0xff]  }
   0xc   :  { %v42_v30 = vpack.c.bf16 %v39_v28, %v39_v28  ;;  %v1183_v31 = vld [vmem:[%s1570_s2 + $0x20] sm:$0xff]   ;;  %v1185_v32 = vld [vmem:[%s1570_s2 + $0x68] sm:$0xff]   ;;  %v1188_v34 = vld [vmem:[%s1570_s2 + $0x70] sm:$0xff]  }
   0xd   :  { %v1186_v33 = vld [vmem:[%s1570_s2 + $0x28] sm:$0xff]   ;;  %v1189_v35 = vld [vmem:[%s1570_s2 + $0x30] sm:$0xff]   ;;  %v1191_v36 = vld [vmem:[%s1570_s2 + $0x78] sm:$0xff]  }
   0xe   :  { %v1192_v37 = vld [vmem:[%s1570_s2 + $0x38] sm:$0xff]   ;;  %v37_v38 = vld [vmem:[%s1568_s0] sm:$0xff]  ;;  %v1195_v41 = vld [vmem:[%s1571_s3 + $0x8] sm:$0xff]  }
   0xf   :  { %v40_v39 = vpack.c.bf16 %v37_v38, %v37_v38  ;;  %v1194_v40 = vld [vmem:[%s1571_s3] sm:$0xff]   ;;  %v1196_v42 = vld [vmem:[%s1571_s3 + $0x10] sm:$0xff]   ;;  %v1197_v43 = vld [vmem:[%s1571_s3 + $0x18] sm:$0xff]   ;;  %s1250_s3 = smov 120  }
  0x10   :  { %v1198_v44 = vld [vmem:[%s1572_s4] sm:$0xff]   ;;  %v1199_v4 = vld [vmem:[%s1572_s4 + $0x8] sm:$0xff]   ;;  %v1200_v5 = vld [vmem:[%s1572_s4 + $0x10] sm:$0xff]  }
  0x11   :  { %v988_v59 = vld [vmem:[%s1577_s9] ss:$0 sm:$0xff]  ;;  %v1201_v6 = vld [vmem:[%s1572_s4 + $0x18] sm:$0xff]   ;;  %v1010_v7 = vld [vmem:[%s1577_s9 + $0x1] ss:$0 sm:$0xff] }
  0x81   :  { %v48_v12 = vpop.permute.xlu0 %47 }
  0x82   :  { %vm49_vm1 = vcmp.eq.s32.totalorder %v48_v12, %v44_v11 }
  0x83   :  { %v979_v14 = vsel %vm49_vm1, 1.0, %v1247_v9 }
  0x84   :  { %v52_v17 = vpack.c.bf16 %v979_v14, %v979_v14 }
  0x86   :  { %985 = vmatmul.mubr.msk.bf16.vlgmr.msra.gmra.mrb[0].mxu0 %vm73_vm2, %v52_v17  ;;  %987 = vmatmul.mubr.msk.bf16.vlgmr.msra.gmra.mrb[0].mxu1 %vm73_vm2, %v52_v17 }
  0x87   :  { %1045 = vmatpush3.bf16.msra.mxu0 %v1175_v15  ;;  %1094 = vmatpush3.bf16.msra.mxu1 %v1184_v16 }
  0x88   :  { %1046 = vmatprep.subr.bf16.mxu0 %v1176_v18  ;;  %1095 = vmatprep.subr.bf16.mxu1 %v1247_v9 }
  0x89   :  { %375 = vmatprep.mubr.bf16.mxu0 %v41_v19  ;;  %1101 = vmatprep.mubr.msk.bf16.mxu1 %vm1248_vm3, %v1247_v9 }
  0x8b   :  { %1047 = vmatpush3.bf16.msra.mxu0 %v1177_v20  ;;  %1096 = vmatpush3.bf16.msra.mxu1 %v1187_v21  ;;  %v607_v21 = vld [vmem:[%s1573_s5] sm:$0xf] }
  0x8c   :  { %1048 = vmatprep.subr.bf16.mxu0 %v1178_v22  ;;  %1097 = vmatprep.subr.bf16.mxu1 %v1247_v9  ;;  %v621_v22 = vsel %vm619_vm5, %v607_v21, 0 }
  0x8f   :  { %1049 = vmatpush3.bf16.msra.mxu0 %v1179_v23  ;;  %1098 = vmatpush3.bf16.msra.mxu1 %v1190_v24  ;;  %v1016_v23 = vld [vmem:[%s1577_s9 + $0x2] ss:$0 sm:$0xff] }
  0x90   :  { %1050 = vmatprep.subr.bf16.mxu0 %v1180_v25  ;;  %1099 = vmatprep.subr.bf16.mxu1 %v1247_v9 }
  0x93   :  { %1051 = vmatpush3.bf16.msra.mxu0 %v1181_v26  ;;  %1100 = vmatpush3.bf16.msra.mxu1 %v1193_v27 }
  0x94   :  { %1052 = vmatprep.subr.bf16.mxu0 %v1182_v29  ;;  %1105 = vmatprep.subr.bf16.mxu1 %v1247_v9 }
  0x96   :  { %1102 = vmatmul.mubr.msk.bf16.vlgmr.msra.gmra.mrb[4].mxu1 %vm339_vm4, %v42_v30 }
  0x97   :  { %1053 = vmatpush3.bf16.msra.mxu0 %v1183_v31  ;;  %1113 = vmatprep.mubr.msk.bf16.mxu1 %vm1248_vm3, %v1247_v9 }
  0x98   :  { %1054 = vmatprep.subr.bf16.mxu0 %v1185_v32  ;;  %1106 = vmatpush3.bf16.msra.mxu1 %v1194_v40 }
  0x99   :  { %1107 = vmatprep.subr.bf16.mxu1 %v1247_v9 }
  0x9b   :  { %1055 = vmatpush3.bf16.msra.mxu0 %v1186_v33 }
  0x9c   :  { %1056 = vmatprep.subr.bf16.mxu0 %v1188_v34  ;;  %1108 = vmatpush3.bf16.msra.mxu1 %v1195_v41  ;;  %v1022_v34 = vld [vmem:[%s1577_s9 + $0x3] ss:$0 sm:$0xff] }
  0x9d   :  { %1109 = vmatprep.subr.bf16.mxu1 %v1247_v9  ;;  %v1202_v41 = vld [vmem:[%s1574_s6] sm:$0xff]  }
  0x9f   :  { %1057 = vmatpush3.bf16.msra.mxu0 %v1189_v35 }
  0xa0   :  { %1058 = vmatprep.subr.bf16.mxu0 %v1191_v36  ;;  %1110 = vmatpush3.bf16.msra.mxu1 %v1196_v42  ;;  %v1203_v42 = vld [vmem:[%s1574_s6 + $0x8] sm:$0xff]  }
  0xa1   :  { %1111 = vmatprep.subr.bf16.mxu1 %v1247_v9 }
  0xa3   :  { %1059 = vmatpush3.bf16.msra.mxu0 %v1192_v37 }
  0xa4   :  { %1117 = vmatprep.subr.bf16.mxu0 %v1247_v9  ;;  %1112 = vmatpush3.bf16.msra.mxu1 %v1197_v43  ;;  %v1204_v43 = vld [vmem:[%s1574_s6 + $0x10] sm:$0xff]  }
  0xa5   :  { %1129 = vmatprep.subr.bf16.mxu1 %v1247_v9 }
  0xa6   :  { %376 = vmatmul.mubr.bf16.vlgmr.msra.gmra.mrb[4].mxu0 %v40_v39 }
  0xa7   :  { %1125 = vmatprep.mubr.msk.bf16.mxu0 %vm1248_vm3, %v1247_v9  ;;  %1118 = vmatpush3.bf16.msra.mxu0 %v1198_v44  ;;  %v1205_v44 = vld [vmem:[%s1574_s6 + $0x18] sm:$0xff]   ;;  %s1253_s6 = smov [#allocation2]  }
  0xa8   :  { %1119 = vmatprep.subr.bf16.mxu0 %v1247_v9  ;;  %s971_s12 = sshll.u32 %s1253_s6, 4  ;;  %s972_s12 = int_to_ptr.vmem [resolvable:$true] %s971_s12 }
  0xa9   :  { %p1227_p1 = scmp.lt.s32.totalorder %s972_s12, %s972_s12 }
  0xab   :  { %1120 = vmatpush3.bf16.msra.mxu0 %v1199_v4  ;;  %v1213_v4 = vld [vmem:[%s1575_s7 + $0x20] ss:$12 sps:$4 sm:$0xff]  }
  0xac   :  { %1121 = vmatprep.subr.bf16.mxu0 %v1247_v9 }
  0xaf   :  { %1122 = vmatpush3.bf16.msra.mxu0 %v1200_v5  ;;  %v1216_v5 = vld [vmem:[%s1575_s7 + $0x34] ss:$12 sps:$4 sm:$0xff]  }
  0xb0   :  { %1123 = vmatprep.subr.bf16.mxu0 %v1247_v9 }
  0xb3   :  { %1124 = vmatpush3.bf16.msra.mxu0 %v1201_v6  ;;  %v1214_v6 = vld [vmem:[%s1575_s7 + $0x30] ss:$12 sps:$4 sm:$0xff]  }
 0x159   :  { %v124_v45 = vpop.f32.mrb[0].mxu0  ;;  %v1431_v46 = vpop.f32.mrb[0].mxu1 }
 0x15a   :  { %v1433_v47 = vpop.f32.mrb[1].mxu1  ;;  %510 = vrot.lane.b32.xlu0 %v124_v45, %s1249_s11  ;;  %v1436_v48 = vpop.f32.mrb[1].mxu0 }
 0x15b   :  { %v169_v49 = vpop.f32.mrb[2].mxu1  ;;  %601 = vrot.lane.b32.xlu1 %v1436_v48, %s1250_s3  ;;  %v128_v50 = vpop.f32.mrb[2].mxu0  ;;  %s1252_s3 = smov 112  }
 0x15c   :  { %v129_v51 = vpop.f32.mrb[3].mxu0  ;;  %v170_v52 = vpop.f32.mrb[3].mxu1 }
 0x15e   :  { %670 = vrot.lane.b32.xlu0 %v1436_v48, %s1249_s11 }
 0x169   :  { %v417_v53 = vpop.f32.mrb[4].mxu1 }
 0x16a   :  { %v1103_v54 = vpop.f32.mrb[5].mxu1 }
 0x16b   :  { %v420_v55 = vpop.f32.mrb[6].mxu1 }
 0x16c   :  { %v1104_v56 = vpop.f32.mrb[7].mxu1 }
 0x179   :  { %v1060_v57 = vpop.f32.mrb[4].mxu0 }
 0x17a   :  { %v1061_v58 = vpop.f32.mrb[5].mxu0 }
 0x17b   :  { %v1062_v60 = vadd.f32 %v1061_v58, %v1060_v57  ;;  %v1063_v61 = vpop.f32.mrb[6].mxu0  ;;  %v1206_v58 = vld [vmem:[%s1575_s7] ss:$12 sps:$4 sm:$0xff]  }
 0x17c   :  { %v1064_v62 = vpop.f32.mrb[7].mxu0  ;;  %v1209_v61 = vld [vmem:[%s1575_s7 + $0x8] ss:$12 sps:$4 sm:$0xff]  }
 0x17d   :  { %v378_v63 = vadd.f32 %v1062_v60, %v988_v59  ;;  %v1208_v59 = vld [vmem:[%s1575_s7 + $0x4] ss:$12 sps:$4 sm:$0xff]  }
 0x17e   :  { %881 = vmatprep.subr.bf16.mxu0 %v1208_v59 }
 0x17f   :  { %v418_v0 = vadd.f32 %v417_v53, %v378_v63  ;;  %v1212_v63 = vld [vmem:[%s1575_s7 + $0x1c] ss:$12 sps:$4 sm:$0xff]  }
 0x181   :  { %v423_v2 = vmax.f32 %v418_v0, 0.0 }
 0x183   :  { %v424_v3 = vpack.c.bf16 %v423_v2, %v423_v2 }
 0x185   :  { %1114 = vmatmul.mubr.msk.bf16.vlgmr.msra.gmra.mrb[8].mxu1 %vm339_vm4, %v424_v3  ;;  %v1210_v3 = vld [vmem:[%s1575_s7 + $0x18] ss:$12 sps:$4 sm:$0xff]  }
 0x186   :  { %1131 = vmatprep.mubr.msk.bf16.mxu1 %vm1248_vm3, %v1247_v9  ;;  %1130 = vmatpush3.bf16.msra.mxu1 %v621_v22 }
 0x187   :  { %1135 = vmatprep.subr.bf16.mxu1 %v1247_v9 }
 0x1cc   :  { %v511_v17 = vpop.permute.xlu0 %510 }
 0x1cd   :  { %v602_v30 = vpop.permute.xlu1 %601 }
 0x1d0   :  { %v671_v49 = vpop.permute.xlu0 %670 }
 0x258   :  { %v501_v8 = vpop.f32.mrb[8].mxu1 }
 0x259   :  { %v502_v11 = vadd.f32 %v1010_v7, %v501_v8  ;;  %v1115_v12 = vpop.f32.mrb[9].mxu1  ;;  %v1217_v7 = vld [vmem:[%s1575_s7 + $0x38] ss:$12 sps:$4 sm:$0xff]  }
 0x25a   :  { %v504_v13 = vpop.f32.mrb[10].mxu1  ;;  %v1220_v8 = vld [vmem:[%s1575_s7 + $0x4c] ss:$12 sps:$4 sm:$0xff]   ;;  %v1221_v12 = vld [vmem:[%s1575_s7 + $0x50] ss:$12 sps:$4 sm:$0xff]  }
 0x25b   :  { %v507_v14 = vmax.f32 %v502_v11, 0.0  ;;  %v1116_v15 = vpop.f32.mrb[11].mxu1  ;;  %v1218_v11 = vld [vmem:[%s1575_s7 + $0x48] ss:$12 sps:$4 sm:$0xff]  }
 0x25d   :  { %v508_v16 = vmul.f32 %v507_v14, %v124_v45 }
 0x25f   :  { %v513_v18 = vadd.f32 %v511_v17, %v508_v16 }
 0x261   :  { %v514_v19 = vmax.f32 %v513_v18, 0.0 }
 0x263   :  { %v515_v20 = vpack.c.bf16 %v514_v19, %v514_v19 }
 0x265   :  { %1126 = vmatmul.mubr.msk.bf16.vlgmr.msra.gmra.mrb[8].mxu0 %vm339_vm4, %v515_v20 }
 0x266   :  { %913 = vmatprep.mubr.bf16.mxu0 %v1246_v1  ;;  %882 = vmatpush1.bf16.msra.mxu0 %v1206_v58 }
 0x267   :  { %883 = vmatprep.subr.bf16.mxu0 %v1212_v63 }
 0x26a   :  { %884 = vmatpush1.bf16.msra.mxu0 %v1210_v3 }
 0x26b   :  { %885 = vmatprep.subr.bf16.mxu0 %v1216_v5 }
 0x26e   :  { %886 = vmatpush1.bf16.msra.mxu0 %v1214_v6 }
 0x26f   :  { %887 = vmatprep.subr.bf16.mxu0 %v1220_v8 }
 0x272   :  { %888 = vmatpush1.bf16.msra.mxu0 %v1218_v11 }
 0x338   :  { %v592_v24 = vpop.f32.mrb[8].mxu0 }
 0x339   :  { %v593_v25 = vadd.f32 %v1016_v23, %v592_v24  ;;  %v1127_v26 = vpop.f32.mrb[9].mxu0 }
 0x33a   :  { %v595_v27 = vpop.f32.mrb[10].mxu0 }
 0x33b   :  { %v598_v28 = vmax.f32 %v593_v25, 0.0  ;;  %v1128_v29 = vpop.f32.mrb[11].mxu0 }
 0x33d   :  { %v599_v1 = vmul.f32 %v598_v28, %v1436_v48 }
 0x33f   :  { %v604_v31 = vadd.f32 %v602_v30, %v599_v1 }
 0x341   :  { %v605_v32 = vmax.f32 %v604_v31, 0.0 }
 0x343   :  { %v606_v33 = vpack.c.bf16 %v605_v32, %v605_v32 }
 0x345   :  { %1132 = vmatmul.mubr.msk.bf16.vlgmr.msra.gmra.mrb[12].mxu1 %vm615_vm6, %v606_v33 }
 0x346   :  { %1143 = vmatprep.mubr.msk.bf16.mxu1 %vm1248_vm3, %v1247_v9  ;;  %1136 = vmatpush3.bf16.msra.mxu1 %v1202_v41 }
 0x347   :  { %1137 = vmatprep.subr.bf16.mxu1 %v1247_v9 }
 0x34a   :  { %1138 = vmatpush3.bf16.msra.mxu1 %v1203_v42 }
 0x34b   :  { %1139 = vmatprep.subr.bf16.mxu1 %v1247_v9 }
 0x34e   :  { %1140 = vmatpush3.bf16.msra.mxu1 %v1204_v43 }
 0x34f   :  { %1141 = vmatprep.subr.bf16.mxu1 %v1247_v9 }
 0x352   :  { %1142 = vmatpush3.bf16.msra.mxu1 %v1205_v44 }
 0x353   :  { %1147 = vmatprep.subr.bf16.mxu1 %v1247_v9 }
 0x418   :  { %v657_v35 = vpop.f32.mrb[12].mxu1 }
 0x419   :  { %v658_v36 = vadd.f32 %v1022_v34, %v657_v35  ;;  %v1133_v37 = vpop.f32.mrb[13].mxu1 }
 0x41a   :  { %v660_v38 = vpop.f32.mrb[14].mxu1 }
 0x41b   :  { %v663_v39 = vmax.f32 %v658_v36, 0.0  ;;  %v1134_v40 = vpop.f32.mrb[15].mxu1 }
 0x41d   :  { %665 = vrot.lane.b32.xlu1 %v663_v39, %s1251_s24 }
 0x421   :  { %672 = vrot.lane.b32.xlu1 %v1431_v46, %s1249_s11 }
 0x48f   :  { %v666_v45 = vpop.permute.xlu1 %665 }
 0x490   :  { %v668_v50 = vmul.f32 %v666_v45, %v1436_v48  ;;  %v1024_v48 = vld [vmem:[%s1577_s9 + $0x4] ss:$0 sm:$0xff] }
 0x493   :  { %v673_v51 = vpop.permute.xlu1 %672 }
 0x494   :  { %v674_v52 = vsel %vm339_vm4, %v671_v49, %v673_v51 }
 0x495   :  { %v676_v53 = vadd.f32 %v674_v52, %v668_v50 }
 0x497   :  { %v677_v54 = vmax.f32 %v676_v53, 0.0 }
 0x499   :  { %v678_v55 = vpack.c.bf16 %v677_v54, %v677_v54 }
 0x49b   :  { %695 = vrot.lane.b32.xlu0 %v678_v55, %s1252_s3 }
 0x49f   :  { %771 = vrot.lane.b32.xlu0 %v1433_v47, %s1249_s11 }
 0x50d   :  { %v696_v56 = vpop.permute.xlu0 %695 }
 0x50e   :  { %1144 = vmatmul.mubr.msk.bf16.vlgmr.msra.gmra.mrb[16].mxu1 %vm339_vm4, %v696_v56 }
 0x50f   :  { %1155 = vmatprep.mubr.msk.bf16.mxu1 %vm1248_vm3, %v1247_v9  ;;  %1148 = vmatpush3.bf16.msra.mxu1 %v1209_v61 }
 0x510   :  { %1149 = vmatprep.subr.bf16.mxu1 %v1247_v9 }
 0x511   :  { %v772_v13 = vpop.permute.xlu0 %771 }
 0x512   :  { %v773_v16 = vsel %vm339_vm4, %v673_v51, %v772_v13 }
 0x513   :  { %1150 = vmatpush3.bf16.msra.mxu1 %v1213_v4 }
 0x514   :  { %1151 = vmatprep.subr.bf16.mxu1 %v1247_v9 }
 0x517   :  { %1152 = vmatpush3.bf16.msra.mxu1 %v1217_v7 }
 0x518   :  { %1153 = vmatprep.subr.bf16.mxu1 %v1247_v9  ;;  %v797_v9 = vshrl.u32 %v43_v10, 7 }
 0x51a   :  { %v798_v21 = vsub.s32 0, %v797_v9  ;;  %v806_v22 = vsub.s32 2, %v797_v9  ;;  %v802_v23 = vsub.s32 1, %v797_v9 }
 0x51b   :  { %1154 = vmatpush3.bf16.msra.mxu1 %v1221_v12 }
 0x5e1   :  { %v758_v57 = vpop.f32.mrb[16].mxu1 }
 0x5e2   :  { %v759_v47 = vadd.f32 %v1024_v48, %v758_v57  ;;  %v1145_v60 = vpop.f32.mrb[17].mxu1 }
 0x5e3   :  { %v761_v62 = vpop.f32.mrb[18].mxu1 }
 0x5e4   :  { %v764_v0 = vmax.f32 %v759_v47, 0.0  ;;  %v1146_v2 = vpop.f32.mrb[19].mxu1 }
 0x5e6   :  { %766 = vrot.lane.b32.xlu1 %v764_v0, %s1251_s24 }
 0x658   :  { %v767_v14 = vpop.permute.xlu1 %766 }
 0x659   :  { %v769_v15 = vmul.f32 %v767_v14, %v1431_v46  ;;  %v794_v46 = vld [vmem:[%s1577_s9 + $0x5] sm:$0x7]  ;;  %s1222_s9 = scalar_lea.vmem %s972_s12, 384 }
 0x65a   :  { %v799_v24 = vrot.slane %v794_v46, %v798_v21  ;;  %v807_v25 = vrot.slane %v794_v46, %v806_v22  ;;  %v803_v26 = vrot.slane %v794_v46, %v802_v23  ;;  %p1223_p0 = scmp.ne.s32.totalorder %s972_s12, %s1222_s9  ;;  %p1228_p2 = scmp.lt.s32.totalorder %s1222_s9, %s1222_s9 }
 0x65b   :  { %v775_v17 = vadd.f32 %v773_v16, %v769_v15 }
 0x65c   :  { %p1229_p3 = por %p1228_p2, %p1227_p1 }
 0x65d   :  { %v776_v18 = vmax.f32 %v775_v17, 0.0 }
 0x65e   :  { %p1230_p4 = pnand %p1229_p3, %p1223_p0 }
 0x65f   :  { %v777_v19 = vpack.c.bf16 %v776_v18, %v776_v18 }
 0x661   :  { %812 = vrot.lane.b32.xlu1 %v777_v19, %s1252_s3 }
 0x6d3   :  { %v813_v20 = vpop.permute.xlu1 %812 }
 0x6d4   :  { %1042 = vmatmul.mubr.msk.bf16.vlgmr.msra.gmra.mrb[12].mxu0 %vm339_vm4, %v813_v20  ;;  %1156 = vmatmul.mubr.msk.bf16.vlgmr.msra.gmra.mrb[20].mxu1 %vm339_vm4, %v813_v20 }
 0x7a7   :  { %v915_v27 = vpop.f32.mrb[12].mxu0  ;;  %v956_v28 = vpop.f32.mrb[20].mxu1 }
 0x7a8   :  { %v916_v29 = vadd.f32 %v915_v27, %v799_v24  ;;  %v957_v1 = vadd.f32 %v956_v28, %v807_v25  ;;  %v917_v30 = vpop.f32.mrb[13].mxu0  ;;  %v1157_v31 = vpop.f32.mrb[21].mxu1 }
 0x7a9   :  { %v918_v32 = vadd.f32 %v917_v30, %v803_v26  ;;  %v919_v10 = vpop.f32.mrb[14].mxu0  ;;  %v959_v33 = vpop.f32.mrb[22].mxu1 }
 0x7aa   :  { %962 = vst [vmem:[#allocation2] sm:$0xff] %v916_v29  ;;  %964 = vst.msk [vmem:[#allocation2 + $0x10] sm:$0xff] %vm339_vm4, %v957_v1  ;;  %v920_v34 = vpop.f32.mrb[15].mxu0  ;;  %v1158_v35 = vpop.f32.mrb[23].mxu1 }
 0x7ab   :  { %963 = vst [vmem:[#allocation2 + $0x8] sm:$0xff] %v918_v32 }
 0x7ac   :  { %1233 = shalt.err (!%p1230_p4)
}
 0x7ad   :  { %s1234_s14 = scalar_lea.hbm %s1578_s10, 384 }
 0x7ae   :  { %p1235_p5 = scmp.ne.s32.totalorder %s1578_s10, %s1234_s14  ;;  %p1238_p6 = scmp.lt.u32.totalorder %s1234_s14, %s1578_s10 }
 0x7b0   :  { %p1240_p7 = pnand %p1238_p6, %p1235_p5 }
 0x7b2   :  { %1243 = shalt.err (!%p1240_p7)
}
 0x7b3   :  { %974 = dma.vmem_to_hbm [thread:$0]  %s972_s12, 384, %s1578_s10, [#allocation3]  }
 0x7b4   :  { %1244 = dma.done.wait [#allocation3], 384  }
 0x7b5   :  { %1245 = vsyncadd [#allocation3], 4294966912 }
 0x7b6   :  { %978 = vsyncpa [#allocation3], 1 }

</bundles_post_ra>
